<compile_context>
chip_gen: v6e
topology: v6e:2x2x1
jax: 0.10.0
libtpu: 0.0.40
codegen_flags: <defaults>
</compile_context>

<pallas_src>
import jax
import jax.numpy as jnp
from jax.experimental import pallas as pl
from jax.experimental.pallas import tpu as pltpu

LANE = 128       # vreg lane width: hidden dim is padded to a multiple of this
_SUBLANE = 16    # sublane-safe batch-tile granularity for both f32 (8) and bf16 (16)


def _round_up(x, m):
    return (x + m - 1) // m * m


def _actor_kernel(x_ref, w1_ref, b1_ref, w2_ref, b2_ref, w3_ref, b3_ref, out_ref):
    """One batch tile of tanh(relu(relu(x@W1+b1)@W2+b2)@W3+b3).

    Matmuls on the MXU with f32 accumulation; bias adds + ReLU on the VPU;
    tanh on the EUP.  The f32 state is cast to the compute dtype here (in the
    kernel, hidden under the input DMA) rather than in the wrapper.
    """
    x = x_ref[...].astype(w1_ref.dtype)

    # fc1 + ReLU
    h1 = jnp.dot(x, w1_ref[...], preferred_element_type=jnp.float32) + b1_ref[...]
    h1 = jnp.maximum(h1, 0.0).astype(w2_ref.dtype)

    # fc2 + ReLU
    h2 = jnp.dot(h1, w2_ref[...], preferred_element_type=jnp.float32) + b2_ref[...]
    h2 = jnp.maximum(h2, 0.0).astype(w3_ref.dtype)

    # fc3 + tanh  (narrow act_p-wide output: no dead-lane MXU pops / EUP work)
    h3 = jnp.dot(h2, w3_ref[...], preferred_element_type=jnp.float32) + b3_ref[...]
    out_ref[...] = jnp.tanh(h3).astype(out_ref.dtype)


def init_actor_params(key, state_size, action_size, hidden_size=64):
    """PyTorch-style nn.Linear init (uniform +-1/sqrt(fan_in)).
    Weights stored transposed vs. PyTorch, i.e. (in_features, out_features)."""
    def linear(k, fan_in, fan_out):
        kw, kb = jax.random.split(k)
        bound = 1.0 / jnp.sqrt(float(fan_in))
        w = jax.random.uniform(kw, (fan_in, fan_out), jnp.float32, -bound, bound)
        b = jax.random.uniform(kb, (1, fan_out), jnp.float32, -bound, bound)
        return w, b

    k1, k2, k3 = jax.random.split(key, 3)
    w1, b1 = linear(k1, state_size, hidden_size)
    w2, b2 = linear(k2, hidden_size, hidden_size)
    w3, b3 = linear(k3, hidden_size, action_size)
    return {"w1": w1, "b1": b1, "w2": w2, "b2": b2, "w3": w3, "b3": b3}


def prepare_actor_params(params, compute_dtype=jnp.bfloat16):
    """One-time (not per-step) prep: zero-pad the hidden dim to a multiple of
    128 (lane-dense MXU operands) and the action dim only to a multiple of 8
    (narrow output slab -> 16x fewer output HBM bytes than padding to 128).
    Weights are cast to the MXU compute dtype; biases stay f32 (added to the
    f32 accumulator).  Zero-padding is exact: padded columns stay 0 through
    ReLU and the padded action columns are sliced off in the wrapper."""
    w1, b1 = params["w1"], params["b1"]
    w2, b2 = params["w2"], params["b2"]
    w3, b3 = params["w3"], params["b3"]

    state_size, hidden = w1.shape
    action = w3.shape[1]
    hid_p = _round_up(hidden, LANE)
    act_p = _round_up(action, 8) if action < LANE else _round_up(action, LANE)

    def pad2(a, rows, cols):
        return jnp.pad(a, ((0, rows - a.shape[0]), (0, cols - a.shape[1])))

    prepared = {
        "w1": pad2(w1, state_size, hid_p).astype(compute_dtype),
        "b1": pad2(b1, 1, hid_p).astype(jnp.float32),
        "w2": pad2(w2, hid_p, hid_p).astype(compute_dtype),
        "b2": pad2(b2, 1, hid_p).astype(jnp.float32),
        "w3": pad2(w3, hid_p, act_p).astype(compute_dtype),
        "b3": pad2(b3, 1, act_p).astype(jnp.float32),
    }
    meta = {
        "state_size": state_size,
        "hidden_padded": hid_p,
        "action_size": action,
        "action_padded": act_p,
        "compute_dtype": compute_dtype,
    }
    return prepared, meta


def actor_forward(state, prepared, meta, batch_tile=4096, vmem_limit_bytes=None):
    """state: (B, state_size) f32. prepared/meta: from prepare_actor_params.

    batch_tile caps the per-step tile (4096 rows ~= 0.4 MiB of tiled operands
    double-buffered -- far under the scoped-VMEM default on v5e/v6e/v7x)."""
    batch, state_size = state.shape
    assert state_size == meta["state_size"]
    hid_p = meta["hidden_padded"]
    act_p = meta["action_padded"]

    # Tile sizing:
    #  * big tiles amortize the ~0.35 us per-grid-step overhead,
    #  * >=2 grid steps whenever the batch allows so v7x's 2 TCs both get work,
    #  * tb derived from cdiv(batch, ntiles) -> no ~2x ragged-tile padding waste.
    ntiles = max(1, pl.cdiv(batch, batch_tile))
    if batch >= 2 * _SUBLANE:
        ntiles = max(ntiles, 2)
    tb = _round_up(pl.cdiv(batch, ntiles), _SUBLANE)
    batch_p = ntiles * tb

    x = state  # f32; cast to compute dtype happens inside the kernel
    if batch_p != batch:
        x = jnp.pad(x, ((0, batch_p - batch), (0, 0)))

    w1, b1, w2, b2, w3, b3 = (prepared[k] for k in ("w1", "b1", "w2", "b2", "w3", "b3"))

    # Weights / biases: full blocks, replicated across the batch grid axis.
    rep = lambda a: pl.BlockSpec(a.shape, lambda i: (0, 0))

    param_bytes = sum(int(p.size) * p.dtype.itemsize for p in (w1, b1, w2, b2, w3, b3))
    cost = pl.CostEstimate(
        flops=2 * batch_p * (state_size * hid_p + hid_p * hid_p + hid_p * act_p),
        transcendentals=batch_p * act_p,
        bytes_accessed=int(x.size) * x.dtype.itemsize + param_bytes + batch_p * act_p * 4,
    )

    out_padded = pl.pallas_call(
        _actor_kernel,
        out_shape=jax.ShapeDtypeStruct((batch_p, act_p), jnp.float32),
        grid=(ntiles,),
        in_specs=[
            pl.BlockSpec((tb, state_size), lambda i: (i, 0)),  # activations: batch-tiled
            rep(w1), rep(b1),
            rep(w2), rep(b2),
            rep(w3), rep(b3),
        ],
        out_specs=pl.BlockSpec((tb, act_p), lambda i: (i, 0)),  # narrow output slab
        compiler_params=pltpu.CompilerParams(
            dimension_semantics=("parallel",),        # shard batch tiles across TCs (v7x)
            vmem_limit_bytes=vmem_limit_bytes,        # set explicitly if scaling tiles further
        ),
        cost_estimate=cost,
    )(x, w1, b1, w2, b2, w3, b3)

    return out_padded[:batch, : meta["action_size"]]


def _reference_forward(state, p):
    """Pure-JAX f32 reference == PyTorch Actor.forward."""
    h1 = jnp.maximum(state @ p["w1"] + p["b1"], 0.0)
    h2 = jnp.maximum(h1 @ p["w2"] + p["b2"], 0.0)
    return jnp.tanh(h2 @ p["w3"] + p["b3"])


if __name__ == "__main__":
    key = jax.random.PRNGKey(0)
    k_params, k_state = jax.random.split(key)

    batch, state_size, action_size, hidden_size = 8, 16, 4, 64
    params = init_actor_params(k_params, state_size, action_size, hidden_size)
    state = jax.random.normal(k_state, (batch, state_size), jnp.float32)

    ref = _reference_forward(state, params)

    # f32 compute path: tight tolerance vs. the reference.
    prep_f32, meta_f32 = prepare_actor_params(params, compute_dtype=jnp.float32)
    out_f32 = jax.block_until_ready(actor_forward(state, prep_f32, meta_f32))
    assert out_f32.shape == (batch, action_size)
    assert jnp.allclose(out_f32, ref, atol=1e-5, rtol=1e-5)

    # bf16 compute path (default for v6e/v7x): f32 accumulation, loose tolerance.
    prep_bf16, meta_bf16 = prepare_actor_params(params, compute_dtype=jnp.bfloat16)
    out_bf16 = jax.block_until_ready(actor_forward(state, prep_bf16, meta_bf16))
    assert out_bf16.shape == (batch, action_size)
    assert jnp.allclose(out_bf16, ref, atol=3e-2, rtol=3e-2)

    # A batch that is not a multiple of the tile granularity (exercises the
    # ragged-batch path: tb sized to cdiv(batch, ntiles), padded rows sliced off).
    state_big = jax.random.normal(jax.random.PRNGKey(1), (300, state_size), jnp.float32)
    out_big = jax.block_until_ready(actor_forward(state_big, prep_f32, meta_f32))
    assert out_big.shape == (300, action_size)
    assert jnp.allclose(out_big, _reference_forward(state_big, params), atol=1e-5, rtol=1e-5)

    print("KERNEL_OK")
</pallas_src>

<mosaic_0001>
module attributes {stable_mosaic.version = 11 : i64} {
  func.func @_actor_kernel(%arg0: i32, %arg1: memref<16x16xf32, #tpu.memory_space<vmem>>, %arg2: memref<16x128xf32, #tpu.memory_space<vmem>>, %arg3: memref<1x128xf32, #tpu.memory_space<vmem>>, %arg4: memref<128x128xf32, #tpu.memory_space<vmem>>, %arg5: memref<1x128xf32, #tpu.memory_space<vmem>>, %arg6: memref<128x8xf32, #tpu.memory_space<vmem>>, %arg7: memref<1x8xf32, #tpu.memory_space<vmem>>, %arg8: memref<16x8xf32, #tpu.memory_space<vmem>>) attributes {dimension_semantics = [#tpu.dimension_semantics<parallel>], iteration_bounds = array<i64: 1>, scalar_prefetch = 0 : i64, scratch_operands = 0 : i64, tpu.core_type = #tpu.core_type<tc>, window_params = [{transform_indices = @transform_0, window_bounds = array<i64: 16, 16>}, {pipeline_mode = #tpu.pipeline_mode<synchronous>, transform_indices = @transform_1, window_bounds = array<i64: 16, 128>}, {pipeline_mode = #tpu.pipeline_mode<synchronous>, transform_indices = @transform_2, window_bounds = array<i64: 1, 128>}, {pipeline_mode = #tpu.pipeline_mode<synchronous>, transform_indices = @transform_3, window_bounds = array<i64: 128, 128>}, {pipeline_mode = #tpu.pipeline_mode<synchronous>, transform_indices = @transform_4, window_bounds = array<i64: 1, 128>}, {pipeline_mode = #tpu.pipeline_mode<synchronous>, transform_indices = @transform_5, window_bounds = array<i64: 128, 8>}, {pipeline_mode = #tpu.pipeline_mode<synchronous>, transform_indices = @transform_6, window_bounds = array<i64: 1, 8>}, {transform_indices = @transform_7, window_bounds = array<i64: 16, 8>}]} {
    %c0 = arith.constant 0 : index
    %c0_0 = arith.constant 0 : index
    %0 = vector.load %arg1[%c0, %c0_0] : memref<16x16xf32, #tpu.memory_space<vmem>>, vector<16x16xf32>
    %c0_1 = arith.constant 0 : index
    %c0_2 = arith.constant 0 : index
    %1 = vector.load %arg2[%c0_1, %c0_2] : memref<16x128xf32, #tpu.memory_space<vmem>>, vector<16x128xf32>
    %cst = arith.constant dense<0.000000e+00> : vector<16x128xf32>
    %2 = tpu.matmul %0, %1, %cst {dimension_numbers = #tpu.dot_dimension_numbers<[1], [0], [0], [1], [0, 0, 1, 1], [], []>} : vector<16x16xf32>, vector<16x128xf32>, vector<16x128xf32> -> vector<16x128xf32>
    %c0_3 = arith.constant 0 : index
    %c0_4 = arith.constant 0 : index
    %3 = vector.load %arg3[%c0_3, %c0_4] : memref<1x128xf32, #tpu.memory_space<vmem>>, vector<1x128xf32>
    %4 = vector.broadcast %3 : vector<1x128xf32> to vector<16x128xf32>
    %5 = arith.addf %2, %4 : vector<16x128xf32>
    %cst_5 = arith.constant 0.000000e+00 : f32
    %6 = vector.broadcast %cst_5 : f32 to vector<16x128xf32>
    %7 = arith.maximumf %5, %6 : vector<16x128xf32>
    %c0_6 = arith.constant 0 : index
    %c0_7 = arith.constant 0 : index
    %8 = vector.load %arg4[%c0_6, %c0_7] : memref<128x128xf32, #tpu.memory_space<vmem>>, vector<128x128xf32>
    %cst_8 = arith.constant dense<0.000000e+00> : vector<16x128xf32>
    %9 = tpu.matmul %7, %8, %cst_8 {dimension_numbers = #tpu.dot_dimension_numbers<[1], [0], [0], [1], [0, 0, 1, 1], [], []>} : vector<16x128xf32>, vector<128x128xf32>, vector<16x128xf32> -> vector<16x128xf32>
    %c0_9 = arith.constant 0 : index
    %c0_10 = arith.constant 0 : index
    %10 = vector.load %arg5[%c0_9, %c0_10] : memref<1x128xf32, #tpu.memory_space<vmem>>, vector<1x128xf32>
    %11 = vector.broadcast %10 : vector<1x128xf32> to vector<16x128xf32>
    %12 = arith.addf %9, %11 : vector<16x128xf32>
    %cst_11 = arith.constant 0.000000e+00 : f32
    %13 = vector.broadcast %cst_11 : f32 to vector<16x128xf32>
    %14 = arith.maximumf %12, %13 : vector<16x128xf32>
    %c0_12 = arith.constant 0 : index
    %c0_13 = arith.constant 0 : index
    %15 = vector.load %arg6[%c0_12, %c0_13] : memref<128x8xf32, #tpu.memory_space<vmem>>, vector<128x8xf32>
    %cst_14 = arith.constant dense<0.000000e+00> : vector<16x8xf32>
    %16 = tpu.matmul %14, %15, %cst_14 {dimension_numbers = #tpu.dot_dimension_numbers<[1], [0], [0], [1], [0, 0, 1, 1], [], []>} : vector<16x128xf32>, vector<128x8xf32>, vector<16x8xf32> -> vector<16x8xf32>
    %c0_15 = arith.constant 0 : index
    %c0_16 = arith.constant 0 : index
    %17 = vector.load %arg7[%c0_15, %c0_16] : memref<1x8xf32, #tpu.memory_space<vmem>>, vector<1x8xf32>
    %18 = vector.broadcast %17 : vector<1x8xf32> to vector<16x8xf32>
    %19 = arith.addf %16, %18 : vector<16x8xf32>
    %20 = math.tanh %19 : vector<16x8xf32>
    %c0_17 = arith.constant 0 : index
    %c0_18 = arith.constant 0 : index
    %21 = vector.load %arg8[%c0_17, %c0_18] : memref<16x8xf32, #tpu.memory_space<vmem>>, vector<16x8xf32>
    tpu.vector_store %arg8[%c0_17, %c0_18], %20 {strides = array<i32>} : memref<16x8xf32, #tpu.memory_space<vmem>>, vector<16x8xf32>,
    return
  }
  func.func @transform_0(%arg0: i32) -> (i32, i32) {
    %c0_i32 = arith.constant 0 : i32
    %c0_i32_0 = arith.constant 0 : i32
    return %arg0, %c0_i32 : i32, i32
  }
  func.func @transform_1(%arg0: i32) -> (i32, i32) {
    %c0_i32 = arith.constant 0 : i32
    %c0_i32_0 = arith.constant 0 : i32
    %c0_i32_1 = arith.constant 0 : i32
    return %c0_i32, %c0_i32_0 : i32, i32
  }
  func.func @transform_2(%arg0: i32) -> (i32, i32) {
    %c0_i32 = arith.constant 0 : i32
    %c0_i32_0 = arith.constant 0 : i32
    %c0_i32_1 = arith.constant 0 : i32
    return %c0_i32, %c0_i32_0 : i32, i32
  }
  func.func @transform_3(%arg0: i32) -> (i32, i32) {
    %c0_i32 = arith.constant 0 : i32
    %c0_i32_0 = arith.constant 0 : i32
    %c0_i32_1 = arith.constant 0 : i32
    return %c0_i32, %c0_i32_0 : i32, i32
  }
  func.func @transform_4(%arg0: i32) -> (i32, i32) {
    %c0_i32 = arith.constant 0 : i32
    %c0_i32_0 = arith.constant 0 : i32
    %c0_i32_1 = arith.constant 0 : i32
    return %c0_i32, %c0_i32_0 : i32, i32
  }
  func.func @transform_5(%arg0: i32) -> (i32, i32) {
    %c0_i32 = arith.constant 0 : i32
    %c0_i32_0 = arith.constant 0 : i32
    %c0_i32_1 = arith.constant 0 : i32
    return %c0_i32, %c0_i32_0 : i32, i32
  }
  func.func @transform_6(%arg0: i32) -> (i32, i32) {
    %c0_i32 = arith.constant 0 : i32
    %c0_i32_0 = arith.constant 0 : i32
    %c0_i32_1 = arith.constant 0 : i32
    return %c0_i32, %c0_i32_0 : i32, i32
  }
  func.func @transform_7(%arg0: i32) -> (i32, i32) {
    %c0_i32 = arith.constant 0 : i32
    %c0_i32_0 = arith.constant 0 : i32
    return %arg0, %c0_i32 : i32, i32
  }
}

</mosaic_0001>

<bundles_post_ra>
// kernel: tpu_custom_call.1
= control target key start
LH: loop header
LB: loop body
LE: loop exit
PB: predicated region body
PF: predicated region fallthrough
CT: control target
= control target key end

     0   :  { %12 = vsyncpa [#allocation3], 0  ;;  %s695_s0 = inlined_call_operand.hbm [shape: f32[16,16], index: 0, kind: input, shape index: {}]   ;;  %s696_s1 = inlined_call_operand.hbm [shape: f32[16,128], index: 1, kind: input, shape index: {}]   ;;  %s697_s2 = inlined_call_operand.vmem [shape: f32[1,128], index: 2, kind: input, shape index: {}]   ;;  %s698_s3 = inlined_call_operand.vmem [shape: f32[128,128], index: 3, kind: input, shape index: {}]   ;;  %s699_s4 = inlined_call_operand.vmem [shape: f32[1,128], index: 4, kind: input, shape index: {}]   ;;  %s700_s5 = inlined_call_operand.vmem [shape: f32[128,8], index: 5, kind: input, shape index: {}]   ;;  %s701_s6 = inlined_call_operand.vmem [shape: f32[1,8], index: 6, kind: input, shape index: {}]   ;;  %s702_s7 = inlined_call_operand.vmem [shape: f32[16,8], index: 7, kind: output, shape index: {}]  }
   0x1   :  { %13 = vsyncpa [#allocation5], 0  ;;  %s532_s24 = smov [#allocation2]  }
   0x2   :  { %s19_s25 = sshll.u32 %s532_s24, 4  ;;  %s20_s25 = int_to_ptr.vmem [resolvable:$true] %s19_s25 }
   0x3   :  { %s496_s26 = scalar_lea.vmem %s20_s25, 256  ;;  %p501_p1 = scmp.lt.s32.totalorder %s20_s25, %s20_s25 }
   0x4   :  { %p497_p0 = scmp.ne.s32.totalorder %s20_s25, %s496_s26  ;;  %p502_p2 = scmp.lt.s32.totalorder %s496_s26, %s496_s26 }
   0x6   :  { %p503_p3 = por %p502_p2, %p501_p1 }
   0x8   :  { %p504_p4 = pnand %p503_p3, %p497_p0 }
   0xa   :  { %507 = shalt.err (!%p504_p4)
}
   0xb   :  { %s533_s27 = smov 128   ;;  %s534_s28 = smov 8  }
   0xc   :  { %25 = dma.hbm_to_vmem [thread:$0]  %s695_s0, 256, %s20_s25, [#allocation3], %s533_s27, %s533_s27, %s534_s28  }
   0xd   :  { %s535_s8 = smov [#allocation4]  }
   0xe   :  { %s31_s9 = sshll.u32 %s535_s8, 4  ;;  %s32_s9 = int_to_ptr.vmem [resolvable:$true] %s31_s9 }
   0xf   :  { %s516_s10 = scalar_lea.vmem %s32_s9, 256  ;;  %p521_p6 = scmp.lt.s32.totalorder %s32_s9, %s32_s9 }
  0x10   :  { %p517_p5 = scmp.ne.s32.totalorder %s32_s9, %s516_s10  ;;  %p522_p7 = scmp.lt.s32.totalorder %s516_s10, %s516_s10 }
  0x12   :  { %p523_p8 = por %p522_p7, %p521_p6 }
  0x14   :  { %p524_p9 = pnand %p523_p8, %p517_p5 }
  0x16   :  { %527 = shalt.err (!%p524_p9)
}
  0x17   :  { %37 = dma.hbm_to_vmem [thread:$0]  %s696_s1, 256, %s32_s9, [#allocation5], %s533_s27, %s533_s27, %s534_s28  }
  0x18   :  { %528 = dma.done.wait [#allocation3], 256  }
  0x19   :  { %529 = vsyncadd [#allocation3], 4294967040 }
  0x1a   :  { %530 = dma.done.wait [#allocation5], 256  }
  0x1b   :  { %531 = vsyncadd [#allocation5], 4294967040  ;;  %vm65_vm0 = vcmask 130048   ;;  %v57_v0 = vld [vmem:[#allocation4 + $0x8] sm:$0xff]  ;;  %v56_v1 = vld [vmem:[#allocation4] sm:$0xff]  ;;  %vm349_vm1 = vcmask 64512  }
  0x1c   :  { %v54_v2 = vld [vmem:[#allocation2] sm:$0xff]  ;;  %403 = vmatprep.subr.mxu0 %v57_v0  ;;  %v164_v3 = vld [vmem:[%s698_s3 + $0x78] sm:$0xff]  ;;  %v163_v4 = vld [vmem:[%s698_s3 + $0x70] sm:$0xff] }
  0x1d   :  { %407 = vmatprep.mubr.msk.f32.mxu0 %vm65_vm0, %v54_v2  ;;  %404 = vmatpush3.msra.mxu0 %v57_v0  ;;  %v55_v5 = vld [vmem:[#allocation2 + $0x8] sm:$0xff]  ;;  %v161_v7 = vld [vmem:[%s698_s3 + $0x60] sm:$0xff]  ;;  %v160_v8 = vld [vmem:[%s698_s3 + $0x58] sm:$0xff] }
  0x1e   :  { %410 = vmatprep.subr.mxu1 %v164_v3  ;;  %405 = vmatprep.subr.mxu0 %v56_v1  ;;  %v162_v6 = vld [vmem:[%s698_s3 + $0x68] sm:$0xff]  ;;  %v159_v9 = vld [vmem:[%s698_s3 + $0x50] sm:$0xff]  ;;  %v157_v11 = vld [vmem:[%s698_s3 + $0x40] sm:$0xff] }
  0x1f   :  { %411 = vmatpush3.msra.mxu1 %v164_v3  ;;  %406 = vmatpush3.msra.mxu0 %v56_v1  ;;  %v158_v10 = vld [vmem:[%s698_s3 + $0x48] sm:$0xff]  ;;  %v156_v12 = vld [vmem:[%s698_s3 + $0x38] sm:$0xff]  ;;  %v155_v13 = vld [vmem:[%s698_s3 + $0x30] sm:$0xff] }
  0x20   :  { %412 = vmatprep.subr.mxu1 %v163_v4  ;;  %408 = vmatmul.mubr.msk.f32.vlgmr.msra.gmra.mxu0 %vm65_vm0, %v55_v5  ;;  %v154_v14 = vld [vmem:[%s698_s3 + $0x28] sm:$0xff]  ;;  %v153_v15 = vld [vmem:[%s698_s3 + $0x20] sm:$0xff]  ;;  %v152_v16 = vld [vmem:[%s698_s3 + $0x18] sm:$0xff] }
  0x21   :  { %413 = vmatpush3.msra.mxu1 %v163_v4  ;;  %v151_v17 = vld [vmem:[%s698_s3 + $0x10] sm:$0xff]  ;;  %v150_v18 = vld [vmem:[%s698_s3 + $0x8] sm:$0xff]  ;;  %v149_v19 = vld [vmem:[%s698_s3] sm:$0xff] }
  0x22   :  { %414 = vmatprep.subr.mxu1 %v162_v6  ;;  %v264_v20 = vld [vmem:[%s700_s5 + $0x78] sm:$0xff]  ;;  %v263_v21 = vld [vmem:[%s700_s5 + $0x70] sm:$0xff]  ;;  %v262_v22 = vld [vmem:[%s700_s5 + $0x68] sm:$0xff] }
  0x23   :  { %415 = vmatpush3.msra.mxu1 %v162_v6  ;;  %445 = vmatprep.subr.mxu0 %v264_v20  ;;  %v261_v23 = vld [vmem:[%s700_s5 + $0x60] sm:$0xff]  ;;  %v260_v24 = vld [vmem:[%s700_s5 + $0x58] sm:$0xff]  ;;  %v259_v25 = vld [vmem:[%s700_s5 + $0x50] sm:$0xff] }
  0x24   :  { %416 = vmatprep.subr.mxu1 %v161_v7  ;;  %446 = vmatpush3.msra.mxu0 %v264_v20  ;;  %v258_v26 = vld [vmem:[%s700_s5 + $0x48] sm:$0xff]  ;;  %v257_v27 = vld [vmem:[%s700_s5 + $0x40] sm:$0xff]  ;;  %v256_v28 = vld [vmem:[%s700_s5 + $0x38] sm:$0xff] }
  0x25   :  { %417 = vmatpush3.msra.mxu1 %v161_v7  ;;  %447 = vmatprep.subr.mxu0 %v263_v21  ;;  %v255_v29 = vld [vmem:[%s700_s5 + $0x30] sm:$0xff]  ;;  %v254_v30 = vld [vmem:[%s700_s5 + $0x28] sm:$0xff]  ;;  %v253_v31 = vld [vmem:[%s700_s5 + $0x20] sm:$0xff] }
  0x26   :  { %418 = vmatprep.subr.mxu1 %v160_v8  ;;  %448 = vmatpush3.msra.mxu0 %v263_v21  ;;  %v358_v32 = vld [vmem:[%s697_s2] ss:$0 sm:$0xff]  ;;  %v252_v39 = vld [vmem:[%s700_s5 + $0x18] sm:$0xff]  ;;  %v251_v40 = vld [vmem:[%s700_s5 + $0x10] sm:$0xff] }
  0x27   :  { %419 = vmatpush3.msra.mxu1 %v160_v8  ;;  %449 = vmatprep.subr.mxu0 %v262_v22  ;;  %v250_v41 = vld [vmem:[%s700_s5 + $0x8] sm:$0xff]  ;;  %v249_v42 = vld [vmem:[%s700_s5] sm:$0xff] }
  0x28   :  { %420 = vmatprep.subr.mxu1 %v159_v9  ;;  %450 = vmatpush3.msra.mxu0 %v262_v22  ;;  %v361_v43 = vld [vmem:[%s699_s4] ss:$0 sm:$0xff] }
  0x29   :  { %421 = vmatpush3.msra.mxu1 %v159_v9  ;;  %451 = vmatprep.subr.mxu0 %v261_v23  ;;  %v362_v50 = vld [vmem:[%s701_s6] ss:$0 sm:$0xff] }
  0x2a   :  { %422 = vmatprep.subr.mxu1 %v158_v10  ;;  %452 = vmatpush3.msra.mxu0 %v261_v23 }
  0x2b   :  { %423 = vmatpush3.msra.mxu1 %v158_v10  ;;  %453 = vmatprep.subr.mxu0 %v260_v24 }
  0x2c   :  { %424 = vmatprep.subr.mxu1 %v157_v11  ;;  %454 = vmatpush3.msra.mxu0 %v260_v24 }
  0x2d   :  { %425 = vmatpush3.msra.mxu1 %v157_v11  ;;  %455 = vmatprep.subr.mxu0 %v259_v25 }
  0x2e   :  { %426 = vmatprep.subr.mxu1 %v156_v12  ;;  %456 = vmatpush3.msra.mxu0 %v259_v25 }
  0x2f   :  { %427 = vmatpush3.msra.mxu1 %v156_v12  ;;  %457 = vmatprep.subr.mxu0 %v258_v26 }
  0x30   :  { %428 = vmatprep.subr.mxu1 %v155_v13  ;;  %458 = vmatpush3.msra.mxu0 %v258_v26 }
  0x31   :  { %429 = vmatpush3.msra.mxu1 %v155_v13  ;;  %459 = vmatprep.subr.mxu0 %v257_v27 }
  0x32   :  { %430 = vmatprep.subr.mxu1 %v154_v14  ;;  %460 = vmatpush3.msra.mxu0 %v257_v27 }
  0x33   :  { %431 = vmatpush3.msra.mxu1 %v154_v14  ;;  %461 = vmatprep.subr.mxu0 %v256_v28 }
  0x34   :  { %432 = vmatprep.subr.mxu1 %v153_v15  ;;  %462 = vmatpush3.msra.mxu0 %v256_v28 }
  0x35   :  { %433 = vmatpush3.msra.mxu1 %v153_v15  ;;  %463 = vmatprep.subr.mxu0 %v255_v29 }
  0x36   :  { %434 = vmatprep.subr.mxu1 %v152_v16  ;;  %464 = vmatpush3.msra.mxu0 %v255_v29 }
  0x37   :  { %435 = vmatpush3.msra.mxu1 %v152_v16  ;;  %465 = vmatprep.subr.mxu0 %v254_v30 }
  0x38   :  { %436 = vmatprep.subr.mxu1 %v151_v17  ;;  %466 = vmatpush3.msra.mxu0 %v254_v30 }
  0x39   :  { %437 = vmatpush3.msra.mxu1 %v151_v17  ;;  %467 = vmatprep.subr.mxu0 %v253_v31 }
  0x3a   :  { %438 = vmatprep.subr.mxu1 %v150_v18  ;;  %468 = vmatpush3.msra.mxu0 %v253_v31 }
  0x3b   :  { %439 = vmatpush3.msra.mxu1 %v150_v18  ;;  %469 = vmatprep.subr.mxu0 %v252_v39 }
  0x3c   :  { %440 = vmatprep.subr.mxu1 %v149_v19  ;;  %470 = vmatpush3.msra.mxu0 %v252_v39 }
  0x3d   :  { %441 = vmatpush3.msra.mxu1 %v149_v19  ;;  %471 = vmatprep.subr.mxu0 %v251_v40 }
  0x3e   :  { %472 = vmatpush3.msra.mxu0 %v251_v40 }
  0x3f   :  { %473 = vmatprep.subr.mxu0 %v250_v41 }
  0x40   :  { %474 = vmatpush3.msra.mxu0 %v250_v41 }
  0x41   :  { %475 = vmatprep.subr.mxu0 %v249_v42 }
  0x42   :  { %476 = vmatpush3.msra.mxu0 %v249_v42 }
  0xe0   :  { %v409_v33 = vpop.f32.mrf.mxu0 }
  0xe1   :  { %v144_v34 = vadd.f32 %v409_v33, %v358_v32 }
  0xe2   :  { %v138_v35 = vpop.f32.mrf.mxu0 }
  0xe3   :  { %v139_v36 = vadd.f32 %v358_v32, %v138_v35  ;;  %v148_v38 = vmax.f32 %v144_v34, 0.0 }
  0xe5   :  { %v147_v37 = vmax.f32 %v139_v36, 0.0 }
  0xe7   :  { %442 = vmatprep.mubr.f32.mxu1 %v147_v37 }
  0xe8   :  { %443 = vmatmul.mubr.f32.vlgmr.msra.gmra.mxu1 %v148_v38 }
 0x1a8   :  { %v444_v44 = vpop.f32.mrf.mxu1 }
 0x1a9   :  { %v244_v45 = vadd.f32 %v444_v44, %v361_v43 }
 0x1aa   :  { %v238_v46 = vpop.f32.mrf.mxu1 }
 0x1ab   :  { %v239_v47 = vadd.f32 %v361_v43, %v238_v46  ;;  %v248_v49 = vmax.f32 %v244_v45, 0.0 }
 0x1ad   :  { %v247_v48 = vmax.f32 %v239_v47, 0.0 }
 0x1af   :  { %477 = vmatprep.mubr.f32.mxu0 %v247_v48 }
 0x1b0   :  { %478 = vmatmul.mubr.f32.vlgmr.msra.gmra.mxu0 %v248_v49 }
 0x270   :  { %v479_v51 = vpop.f32.mrf.mxu0 }
 0x271   :  { %v344_v52 = vadd.f32 %v479_v51, %v362_v50 }
 0x272   :  { %v338_v53 = vpop.f32.mrf.mxu0 }
 0x273   :  { %484 = vtanh.f32 %v344_v52  ;;  %v339_v54 = vadd.f32 %v362_v50, %v338_v53 }
 0x275   :  { %486 = vtanh.f32 %v339_v54 }
 0x280   :  { %v485_v55 = vpop.eup %484 }
 0x281   :  { %351 = vst.msk [vmem:[%s702_s7 + $0x8] sm:$0xff] %vm349_vm1, %v485_v55 }
 0x282   :  { %v487_v56 = vpop.eup %486 }
 0x283   :  { %350 = vst.msk [vmem:[%s702_s7] sm:$0xff] %vm349_vm1, %v487_v56 }
 0x284   :  { %356 = vsyncpa [#allocation3], 1 }
 0x285   :  { %357 = vsyncpa [#allocation5], 1 }

</bundles_post_ra>
